<compile_context>
chip_gen: v7x
topology: tpu7x:2x2x1
jax: 0.10.0
libtpu: 0.0.40
codegen_flags: <defaults>
</compile_context>

<pallas_src>
import jax
import jax.numpy as jnp
from jax.experimental import pallas as pl
from jax.experimental.pallas import tpu as pltpu


# ----------------------------------------------------------------------------
# Kernel body
# ----------------------------------------------------------------------------
def _rmsnorm_body(x_ref, scale_ref, offset_ref, mask_ref, o_ref, *,
                  eps, d_x, partial_size, low_precision_out):
    # x_ref: (row_tile, d); scale_ref/offset_ref/mask_ref: (1, d); o_ref like x.
    x = x_ref[...]
    xf = x.astype(jnp.float32)
    if partial_size is None:
        xp = xf
    elif mask_ref is not None:
        # Non-lane-aligned partial width: one vmul with a precomputed 0/1
        # mask (cheaper than iota + compare + select on the VPU).
        xp = xf * mask_ref[...]
    else:
        # Lane-aligned slice is free.
        xp = xf[:, :partial_size]

    # torch: norm_x = ||x_p||_2 ; rms_x = norm_x / sqrt(d_x) ; x / (rms_x + eps)
    sumsq = jnp.sum(xp * xp, axis=-1, keepdims=True)            # (row_tile, 1)
    rms_x = jnp.sqrt(sumsq) * (float(d_x) ** -0.5)
    # Exact per-row reciprocal: negligible cost, identical numerics to the
    # reference (the approx=True EUP reciprocal caused the earlier mismatch).
    inv = 1.0 / (rms_x + eps)                                    # (row_tile, 1)

    if low_precision_out:
        # Output-side math in the (16-bit) I/O dtype: only square+sum stays
        # in f32.  Halves vregs/element on the output-side vmuls.
        out = x * inv.astype(x.dtype)
        out = out * scale_ref[...].astype(x.dtype)
        if offset_ref is not None:
            out = out + offset_ref[...].astype(x.dtype)
    else:
        out = (xf * inv) * scale_ref[...].astype(jnp.float32)
        if offset_ref is not None:
            out = out + offset_ref[...].astype(jnp.float32)
    o_ref[...] = out.astype(o_ref.dtype)


# ----------------------------------------------------------------------------
# Hardware queries (best-effort; safe fallbacks for interpret / unknown chips)
# ----------------------------------------------------------------------------
def _tpu_info():
    try:
        return pltpu.get_tpu_info()
    except Exception:
        return None


def _vmem_capacity_bytes(info):
    cap = getattr(info, "vmem_capacity_bytes", None) if info is not None else None
    if cap:
        try:
            return int(cap)
        except (TypeError, ValueError):
            pass
    # Fall back to the smallest current part (v7x: 64 MiB per TensorCore).
    return 64 * 1024 * 1024


def _num_tensorcores(info):
    if info is None:
        return 1
    for name in ("num_cores", "core_count", "num_tensorcores",
                 "tensorcores_per_chip", "cores_per_chip"):
        v = getattr(info, name, None)
        if v is None:
            continue
        try:
            v = int(v)
        except (TypeError, ValueError):
            continue
        if v > 0:
            return v
    return 1


def _is_v5(info):
    cv = getattr(info, "chip_version", None) if info is not None else None
    return cv is not None and "5" in str(cv)


# ----------------------------------------------------------------------------
# Tile sizing
# ----------------------------------------------------------------------------
def _sublane_packing(dtype):
    itemsize = jnp.dtype(dtype).itemsize
    if itemsize >= 4:
        return 8
    if itemsize == 2:
        return 16
    return 32


def _round_up(x, m):
    return -(-x // m) * m


# Input-block byte target: comfortably above the measured ~1-2 MiB knee where
# streaming kernels fall off the HBM roofline, small enough to leave VMEM
# headroom everywhere (including the 64 MiB v7x part).
_TARGET_BLOCK_BYTES = 8 * 1024 * 1024


def _pick_row_tile(rows, d, dtype, vmem_cap, num_cores):
    """Row tile sized in bytes (not a fixed row cap): ~8 MiB input block,
    bounded by a conservative VMEM budget (2x double-buffered in + out blocks
    in the I/O dtype plus ~4 live f32 temporaries for the block being
    computed)."""
    packing = _sublane_packing(dtype)
    itemsize = jnp.dtype(dtype).itemsize
    per_row_vmem = d * (4 * itemsize + 4 * 4)
    budget = int(vmem_cap * 0.45)          # leave compiler / spill headroom
    row_tile = min(_TARGET_BLOCK_BYTES // max(d * itemsize, 1),
                   budget // max(per_row_vmem, 1))
    row_tile = max(packing, row_tile)
    if num_cores > 1 and rows > packing:
        # Multi-TC (v7x): keep >= 2 grid steps per core so the BlockSpec
        # pipeline can hide DMA warmup/drain on each core.  Single-TC chips
        # (v5e/v6e) get no clamp: biggest block always wins when HBM-bound.
        min_steps = 2 * num_cores
        row_tile = min(row_tile,
                       max(packing, _round_up(-(-rows // min_steps), packing)))
    row_tile = min(row_tile, _round_up(rows, packing))
    row_tile = max(packing, (row_tile // packing) * packing)
    return row_tile


# ----------------------------------------------------------------------------
# Public wrapper
# ----------------------------------------------------------------------------
def rmsnorm(x, scale, offset=None, *, p=-1.0, eps=1e-8, row_tile=None,
            low_precision_out=None):
    """RMSNorm over the last dim of x.  x: [..., d], scale/offset: [d]."""
    d = x.shape[-1]
    orig_shape = x.shape
    x2 = x.reshape(-1, d)
    rows = x2.shape[0]

    info = _tpu_info()
    vmem_cap = _vmem_capacity_bytes(info)
    num_cores = _num_tensorcores(info)
    if row_tile is None:
        row_tile = _pick_row_tile(rows, d, x2.dtype, vmem_cap, num_cores)
    if low_precision_out is None:
        # 16-bit I/O dtypes keep the output-side math in the I/O dtype, except
        # on v5-generation parts (no bf16 VALU there).
        low_precision_out = (jnp.dtype(x2.dtype).itemsize == 2
                             and not _is_v5(info))

    if p < 0.0 or p > 1.0:
        partial_size = None
        d_x = d
    else:
        partial_size = int(d * p)
        if partial_size <= 0:
            raise ValueError(
                f"partial RMSNorm width int(d*p) = {partial_size} must be > 0")
        if partial_size >= d:
            partial_size = None       # p == 1.0 -> same as full-width RMSNorm
            d_x = d
        else:
            d_x = partial_size

    use_bias = offset is not None
    use_mask = partial_size is not None and partial_size % 128 != 0

    inputs = [x2, scale.reshape(1, d)]
    in_specs = [
        pl.BlockSpec((row_tile, d), lambda i: (i, 0)),
        # Constant index_map: stays VMEM-resident across grid steps.
        pl.BlockSpec((1, d), lambda i: (0, 0)),
    ]
    if use_bias:
        inputs.append(offset.reshape(1, d))
        in_specs.append(pl.BlockSpec((1, d), lambda i: (0, 0)))
    if use_mask:
        mask = (jnp.arange(d, dtype=jnp.int32) < partial_size)
        inputs.append(mask.astype(jnp.float32).reshape(1, d))
        in_specs.append(pl.BlockSpec((1, d), lambda i: (0, 0)))

    def kernel(*refs):
        refs = list(refs)
        x_ref = refs.pop(0)
        s_ref = refs.pop(0)
        off_ref = refs.pop(0) if use_bias else None
        mask_ref = refs.pop(0) if use_mask else None
        o_ref = refs.pop(0)
        _rmsnorm_body(x_ref, s_ref, off_ref, mask_ref, o_ref, eps=eps,
                      d_x=d_x, partial_size=partial_size,
                      low_precision_out=low_precision_out)

    itemsize = jnp.dtype(x2.dtype).itemsize
    param_bytes = d * jnp.dtype(scale.dtype).itemsize
    if use_bias:
        param_bytes += d * jnp.dtype(offset.dtype).itemsize
    if use_mask:
        param_bytes += d * 4
    cost = pl.CostEstimate(
        flops=4 * rows * d,
        transcendentals=2 * rows,
        bytes_accessed=2 * rows * d * itemsize + param_bytes,
    )

    # No padding / slicing: grid = cdiv; Pallas clamps the ragged boundary
    # block (rows are independent, so dropped OOB rows are harmless).
    grid_len = pl.cdiv(rows, row_tile)

    if num_cores > 1 and grid_len % num_cores == 0:
        # Only CORE_PARALLEL actually shards a grid axis across TensorCores
        # (plain "parallel" has near-zero measured codegen effect).
        dim_sem = (pltpu.CORE_PARALLEL,)
    else:
        dim_sem = ("parallel",)

    out = pl.pallas_call(
        kernel,
        out_shape=jax.ShapeDtypeStruct((rows, d), x.dtype),
        grid_spec=pltpu.PrefetchScalarGridSpec(
            num_scalar_prefetch=0,
            grid=(grid_len,),
            in_specs=in_specs,
            out_specs=pl.BlockSpec((row_tile, d), lambda i: (i, 0)),
        ),
        compiler_params=pltpu.CompilerParams(
            dimension_semantics=dim_sem,
            # Keep an explicit raised limit (scoped default is only 16 MiB on
            # v5e); the 45%-of-cap tile budget keeps real usage well below it.
            vmem_limit_bytes=int(vmem_cap * 3 // 4),
        ),
        cost_estimate=cost,
    )(*inputs)

    return out.reshape(orig_shape)


# ----------------------------------------------------------------------------
# Pure-JAX reference (matches the torch forward semantics)
# ----------------------------------------------------------------------------
def rmsnorm_ref(x, scale, offset=None, *, p=-1.0, eps=1e-8):
    d = x.shape[-1]
    xf = x.astype(jnp.float32)
    if p < 0.0 or p > 1.0:
        xp = xf
        d_x = d
    else:
        partial_size = int(d * p)
        xp = xf[..., :partial_size]
        d_x = partial_size
    norm_x = jnp.sqrt(jnp.sum(xp * xp, axis=-1, keepdims=True))
    rms_x = norm_x * (float(d_x) ** -0.5)
    x_normed = xf / (rms_x + eps)
    out = scale.astype(jnp.float32) * x_normed
    if offset is not None:
        out = out + offset.astype(jnp.float32)
    return out.astype(x.dtype)


if __name__ == "__main__":
    key = jax.random.PRNGKey(0)
    k_x, k_s, k_x2 = jax.random.split(key, 3)
    batch, seq, hidden = 2, 8, 32

    x = jax.random.normal(k_x, (batch, seq, hidden), dtype=jnp.float32)
    # Non-trivial scale (torch init is ones; forward works for any value).
    scale = 1.0 + 0.1 * jax.random.normal(k_s, (hidden,), dtype=jnp.float32)

    # 1) Default config: p disabled, no bias (matches RMSNorm(hidden)).
    out = jax.block_until_ready(rmsnorm(x, scale, p=-1.0, eps=1e-8))
    ref = rmsnorm_ref(x, scale, p=-1.0, eps=1e-8)
    assert out.shape == x.shape and out.dtype == x.dtype
    assert jnp.allclose(out, ref, atol=1e-4, rtol=1e-3), "mismatch (default)"

    # 2) Partial RMSNorm + bias (p=0.5 -> non-lane-aligned width 16 -> mask).
    offset = jnp.full((hidden,), 0.1, dtype=jnp.float32)
    out2 = jax.block_until_ready(rmsnorm(x, scale, offset, p=0.5, eps=1e-8))
    ref2 = rmsnorm_ref(x, scale, offset, p=0.5, eps=1e-8)
    assert jnp.allclose(out2, ref2, atol=1e-4, rtol=1e-3), "mismatch (partial+bias)"

    # 3) Ragged boundary block: rows % row_tile != 0 (15 rows, tile of 8).
    xr = jax.random.normal(k_x2, (3, 5, hidden), dtype=jnp.float32)
    out3 = jax.block_until_ready(rmsnorm(xr, scale, row_tile=8))
    ref3 = rmsnorm_ref(xr, scale)
    assert jnp.allclose(out3, ref3, atol=1e-4, rtol=1e-3), "mismatch (ragged)"

    # 4) bf16 I/O (exercises the low-precision output-side path).
    xb = x.astype(jnp.bfloat16)
    sb = scale.astype(jnp.bfloat16)
    out4 = jax.block_until_ready(rmsnorm(xb, sb))
    ref4 = rmsnorm_ref(xb, sb)
    assert out4.shape == xb.shape and out4.dtype == jnp.bfloat16
    assert jnp.allclose(out4.astype(jnp.float32), ref4.astype(jnp.float32),
                        atol=5e-2, rtol=5e-2), "mismatch (bf16)"

    print("KERNEL_OK")
</pallas_src>

<mosaic_0001>
module attributes {stable_mosaic.version = 11 : i64} {
  func.func @kernel(%arg0: i32, %arg1: memref<16x32xf32, #tpu.memory_space<vmem>>, %arg2: memref<1x32xf32, #tpu.memory_space<vmem>>, %arg3: memref<16x32xf32, #tpu.memory_space<vmem>>) attributes {dimension_semantics = [#tpu.dimension_semantics<parallel>], iteration_bounds = array<i64: 1>, scalar_prefetch = 0 : i64, scratch_operands = 0 : i64, tpu.core_type = #tpu.core_type<tc>, window_params = [{transform_indices = @transform_0, window_bounds = array<i64: 16, 32>}, {pipeline_mode = #tpu.pipeline_mode<synchronous>, transform_indices = @transform_1, window_bounds = array<i64: 1, 32>}, {transform_indices = @transform_2, window_bounds = array<i64: 16, 32>}]} {
    %c0 = arith.constant 0 : index
    %c0_0 = arith.constant 0 : index
    %0 = vector.load %arg1[%c0, %c0_0] : memref<16x32xf32, #tpu.memory_space<vmem>>, vector<16x32xf32>
    %1 = arith.mulf %0, %0 : vector<16x32xf32>
    %cst = arith.constant dense<0.000000e+00> : vector<16xf32>
    %2 = vector.multi_reduction <add>, %1, %cst [1] : vector<16x32xf32> to vector<16xf32>
    %3 = vector.shape_cast %2 : vector<16xf32> to vector<16x1xf32>
    %4 = math.sqrt %3 : vector<16x1xf32>
    %cst_1 = arith.constant 0.176776692 : f32
    %5 = vector.broadcast %cst_1 : f32 to vector<16x1xf32>
    %6 = arith.mulf %4, %5 : vector<16x1xf32>
    %cst_2 = arith.constant 9.99999993E-9 : f32
    %7 = vector.broadcast %cst_2 : f32 to vector<16x1xf32>
    %8 = arith.addf %6, %7 : vector<16x1xf32>
    %cst_3 = arith.constant 1.000000e+00 : f32
    %9 = vector.broadcast %cst_3 : f32 to vector<16x1xf32>
    %10 = arith.divf %9, %8 : vector<16x1xf32>
    %11 = vector.broadcast %10 : vector<16x1xf32> to vector<16x32xf32>
    %12 = arith.mulf %0, %11 : vector<16x32xf32>
    %c0_4 = arith.constant 0 : index
    %c0_5 = arith.constant 0 : index
    %13 = vector.load %arg2[%c0_4, %c0_5] : memref<1x32xf32, #tpu.memory_space<vmem>>, vector<1x32xf32>
    %14 = vector.broadcast %13 : vector<1x32xf32> to vector<16x32xf32>
    %15 = arith.mulf %12, %14 : vector<16x32xf32>
    %c0_6 = arith.constant 0 : index
    %c0_7 = arith.constant 0 : index
    %16 = vector.load %arg3[%c0_6, %c0_7] : memref<16x32xf32, #tpu.memory_space<vmem>>, vector<16x32xf32>
    tpu.vector_store %arg3[%c0_6, %c0_7], %15 {strides = array<i32>} : memref<16x32xf32, #tpu.memory_space<vmem>>, vector<16x32xf32>,
    return
  }
  func.func @transform_0(%arg0: i32) -> (i32, i32) {
    %c0_i32 = arith.constant 0 : i32
    %c0_i32_0 = arith.constant 0 : i32
    return %arg0, %c0_i32 : i32, i32
  }
  func.func @transform_1(%arg0: i32) -> (i32, i32) {
    %c0_i32 = arith.constant 0 : i32
    %c0_i32_0 = arith.constant 0 : i32
    %c0_i32_1 = arith.constant 0 : i32
    return %c0_i32, %c0_i32_0 : i32, i32
  }
  func.func @transform_2(%arg0: i32) -> (i32, i32) {
    %c0_i32 = arith.constant 0 : i32
    %c0_i32_0 = arith.constant 0 : i32
    return %arg0, %c0_i32 : i32, i32
  }
}

</mosaic_0001>

<bundles_post_ra>
// kernel: tpu_custom_call.1
= control target key start
LH: loop header
LB: loop body
LE: loop exit
PB: predicated region body
PF: predicated region fallthrough
CT: control target
= control target key end

     0   :  { %7 = vsyncpa [#allocation3], 0  ;;  %s206_s0 = inlined_call_operand.hbm [shape: f32[16,32], index: 0, kind: input, shape index: {}]   ;;  %s207_s1 = inlined_call_operand.vmem [shape: f32[1,32], index: 1, kind: input, shape index: {}]   ;;  %s208_s2 = inlined_call_operand.hbm [shape: f32[16,32], index: 2, kind: output, shape index: {}]  }
   0x1   :  { %8 = vsyncpa [#allocation4], 0  ;;  %s150_s9 = smov [#allocation2]   ;;  %s102_s13 = scalar_lea.hbm %s206_s0, 256 }
   0x2   :  { %s14_s10 = sshll.u32 %s150_s9, 4  ;;  %p103_p0 = scmp.ne.s32.totalorder %s206_s0, %s102_s13  ;;  %s15_s10 = int_to_ptr.vmem [resolvable:$true] %s14_s10 }
   0x3   :  { %p106_p1 = scmp.lt.u32.totalorder %s102_s13, %s206_s0 }
   0x5   :  { %p108_p2 = pnand %p106_p1, %p103_p0 }
   0x7   :  { %111 = shalt.err (!%p108_p2)
}
   0x8   :  { %s112_s18 = scalar_lea.vmem %s15_s10, 256  ;;  %p117_p4 = scmp.lt.s32.totalorder %s15_s10, %s15_s10 }
   0x9   :  { %p113_p3 = scmp.ne.s32.totalorder %s15_s10, %s112_s18  ;;  %p118_p5 = scmp.lt.s32.totalorder %s112_s18, %s112_s18 }
   0xb   :  { %p119_p6 = por %p118_p5, %p117_p4 }
   0xd   :  { %p120_p7 = pnand %p119_p6, %p113_p3 }
   0xf   :  { %123 = shalt.err (!%p120_p7)
}
  0x10   :  { %s151_s19 = smov 128   ;;  %s152_s20 = smov 8  }
  0x11   :  { %20 = dma.hbm_to_vmem [thread:$0]  %s206_s0, 256, %s15_s10, [#allocation3], %s151_s19, %s151_s19, %s152_s20  }
  0x12   :  { %146 = dma.done.wait [#allocation3], 256  }
  0x13   :  { %147 = vsyncadd [#allocation3], 4294967040  ;;  %v26_v0 = vld [vmem:[#allocation2] sm:$0xff]  ;;  %vm30_vm0 = vcmask 261120   ;;  %v27_v1 = vld [vmem:[#allocation2 + $0x8] sm:$0xff]  ;;  %s153_s24 = smov [#allocation5]  }
  0x14   :  { %v28_v2 = vmul.f32 %v26_v0, %v26_v0  ;;  %v29_v3 = vmul.f32 %v27_v1, %v27_v1  ;;  %v89_v23 = vld [vmem:[%s207_s1] ss:$0 sm:$0xff]  ;;  %s77_s25 = sshll.u32 %s153_s24, 4  ;;  %s78_s25 = int_to_ptr.vmem [resolvable:$true] %s77_s25 }
  0x15   :  { %s124_s26 = scalar_lea.vmem %s78_s25, 256  ;;  %p129_p9 = scmp.lt.s32.totalorder %s78_s25, %s78_s25 }
  0x16   :  { %v31_v4 = vsel %vm30_vm0, %v28_v2, 0.0  ;;  %v34_v5 = vsel %vm30_vm0, %v29_v3, 0.0  ;;  %p125_p8 = scmp.ne.s32.totalorder %s78_s25, %s124_s26  ;;  %p130_p10 = scmp.lt.s32.totalorder %s124_s26, %s124_s26 }
  0x17   :  { %32 = vadd.xlane.f32.xlu0 %v31_v4 }
  0x18   :  { %p131_p11 = por %p130_p10, %p129_p9 }
  0x1a   :  { %p132_p12 = pnand %p131_p11, %p125_p8 }
  0x1b   :  { %35 = vadd.xlane.f32.xlu0 %v34_v5 }
  0xa4   :  { %v33_v6 = vpop.xlane.xlu0 %32 }
  0xa5   :  { %94 = vrsqrt.f32 %v33_v6  ;;  %vm39_vm1 = vcmp.eq.f32.partialorder %v33_v6, inf  ;;  %v42_v10 = vand.u32 2147483648, %v33_v6  ;;  %vm41_vm2 = vcmp.eq.f32.partialorder %v33_v6, 0.0 }
  0xa8   :  { %v36_v7 = vpop.xlane.xlu0 %35 }
  0xa9   :  { %96 = vrsqrt.f32 %v36_v7  ;;  %vm46_vm3 = vcmp.eq.f32.partialorder %v36_v7, inf  ;;  %v49_v16 = vand.u32 2147483648, %v36_v7  ;;  %vm48_vm4 = vcmp.eq.f32.partialorder %v36_v7, 0.0 }
  0xaf   :  { %v95_v8 = vpop.eup %94 }
  0xb0   :  { %v38_v9 = vmul.f32 %v95_v8, %v33_v6 }
  0xb2   :  { %v40_v11 = vsel %vm39_vm1, %v33_v6, %v38_v9 }
  0xb3   :  { %v97_v12 = vpop.eup %96  ;;  %v43_v13 = vsel %vm41_vm2, %v42_v10, %v40_v11 }
  0xb4   :  { %v51_v14 = vmul.f32 0.17677669, %v43_v13  ;;  %v45_v15 = vmul.f32 %v97_v12, %v36_v7 }
  0xb6   :  { %v53_v17 = vadd.f32 1e-08, %v51_v14  ;;  %v47_v18 = vsel %vm46_vm3, %v36_v7, %v45_v15 }
  0xb7   :  { %v50_v19 = vsel %vm48_vm4, %v49_v16, %v47_v18 }
  0xb8   :  { %98 = vrcp.f32 %v53_v17  ;;  %v52_v20 = vmul.f32 0.17677669, %v50_v19 }
  0xba   :  { %v54_v21 = vadd.f32 1e-08, %v52_v20 }
  0xbc   :  { %100 = vrcp.f32 %v54_v21 }
  0xc2   :  { %v99_v22 = vpop.eup %98 }
  0xc3   :  { %v59_v24 = vmul.f32 %v99_v22, %v26_v0 }
  0xc5   :  { %v68_v25 = vmul.f32 %v89_v23, %v59_v24 }
  0xc6   :  { %v101_v26 = vpop.eup %100 }
  0xc7   :  { %v60_v27 = vmul.f32 %v101_v26, %v27_v1  ;;  %70 = vst.msk [vmem:[#allocation5] sm:$0xff] %vm30_vm0, %v68_v25 }
  0xc9   :  { %v69_v28 = vmul.f32 %v89_v23, %v60_v27 }
  0xcb   :  { %71 = vst.msk [vmem:[#allocation5 + $0x8] sm:$0xff] %vm30_vm0, %v69_v28 }
  0xcc   :  { %135 = shalt.err (!%p132_p12)
}
  0xcd   :  { %s136_s28 = scalar_lea.hbm %s208_s2, 256 }
  0xce   :  { %p137_p13 = scmp.ne.s32.totalorder %s208_s2, %s136_s28  ;;  %p140_p0 = scmp.lt.u32.totalorder %s136_s28, %s208_s2 }
  0xd0   :  { %p142_p1 = pnand %p140_p0, %p137_p13 }
  0xd2   :  { %145 = shalt.err (!%p142_p1)
}
  0xd3   :  { %83 = dma.vmem_to_hbm [thread:$0]  %s78_s25, 256, %s208_s2, [#allocation4], %s151_s19, %s151_s19, %s152_s20  }
  0xd4   :  { %148 = dma.done.wait [#allocation4], 256  }
  0xd5   :  { %149 = vsyncadd [#allocation4], 4294967040 }
  0xd6   :  { %87 = vsyncpa [#allocation3], 1 }
  0xd7   :  { %88 = vsyncpa [#allocation4], 1 }

</bundles_post_ra>
